<compile_context>
chip_gen: v5e
topology: v5e:2x2
jax: 0.10.0
libtpu: 0.0.40
codegen_flags: <defaults>
</compile_context>

<pallas_src>
import functools

import jax
import jax.numpy as jnp
from jax.experimental import pallas as pl
from jax.experimental.pallas import tpu as pltpu

EPS = 1e-6  # matches torch.nn.functional.pairwise_distance default eps


def _physical_vmem_bytes():
    """Best-effort physical VMEM per TensorCore (128 MiB v5e/v6e, 64 MiB v7x)."""
    try:
        info = pltpu.get_tpu_info()
        v = getattr(info, "vmem_capacity_bytes", None)
        if isinstance(v, int) and v > 0:
            return v
    except Exception:
        pass
    return 64 * 1024 * 1024  # conservative default: fits every generation


def _detect_num_tensorcores():
    """2 on v7x-style chips (2 TensorCores per chip), else 1 (v5e/v6e)."""
    try:
        kind = jax.local_devices()[0].device_kind.lower()
    except Exception:
        return 1
    return 2 if ("v7" in kind or "7x" in kind) else 1


def _contrastive_loss_kernel(x1_ref, x2_ref, lbl_ref, out_ref, acc_ref, *,
                             margin, batch_size, block_rows, tiles_per_core,
                             mask_from, needs_mask):
    c = pl.program_id(0)           # TensorCore-split axis
    t = pl.program_id(1)           # batch-tile axis ('arbitrary', reduction)

    @pl.when(t == 0)
    def _():
        acc_ref[...] = jnp.zeros_like(acc_ref)

    # Native-dtype DMA, f32 compute (casts are cheap VPU work hidden under the DMA).
    # TODO(synk): for bf16 inputs on chips with a bf16 VALU (v6e/v7x) the subtract
    # could run in bf16 before a single f32 cast to shave one VPU pass per element.
    x1 = x1_ref[...].astype(jnp.float32)
    x2 = x2_ref[...].astype(jnp.float32)
    lbl = lbl_ref[...]                                     # (TB, 1) f32 from wrapper

    diff = (x1 - x2) + EPS                                 # torch pairwise_distance eps
    sq = jnp.sum(diff * diff, axis=-1, keepdims=True)      # (TB, 1) squared distance
    dist = jnp.sqrt(sq)                                    # EUP slot (otherwise idle)
    hinge = jnp.maximum(margin - dist, 0.0)
    loss = lbl * sq + (1.0 - lbl) * (hinge * hinge)        # reuse sq for the pos term
    # TODO(synk): on v7x with D <= ~512 a lane-dense tail (relayout the (TB,1) per-row
    # vector to (TB//128, 128) before sqrt/hinge) would trim residual VPU work; kept
    # sublane-major here because sublane->lane reshape support is version-dependent.

    if needs_mask:
        # Only the last real (partial) tile and the core-padding duplicate tile can
        # hold invalid rows; every other step skips the iota/compare/select entirely.
        g = c * tiles_per_core + t                         # *unclamped* global tile id

        @pl.when(g < mask_from)
        def _():
            acc_ref[...] += loss

        @pl.when(g >= mask_from)
        def _():
            # For the padded duplicate tile g >= num_tiles, so row >= num_tiles*TB >=
            # batch_size and the single row test also prevents double-counting the
            # clamped (re-read) last tile.
            row = g * block_rows + jax.lax.broadcasted_iota(jnp.int32, loss.shape, 0)
            acc_ref[...] += jnp.where(row < batch_size, loss, 0.0)
    else:
        acc_ref[...] += loss

    @pl.when(t == pl.num_programs(1) - 1)
    def _():
        # One cross-sublane reduce per core; broadcast the partial sum over a full
        # (8,128) tile so the output store stays lane-dense / unmasked.
        out_ref[...] = jnp.broadcast_to(jnp.sum(acc_ref[...]), out_ref.shape)


def contrastive_loss(x1, x2, label, margin=1.0, block_rows=None, num_cores=None):
    """Mean contrastive loss over the batch. x1/x2: (B, D); label: (B,) or (B, 1)."""
    B, D = x1.shape
    lbl2d = jnp.asarray(label).reshape(B, 1).astype(jnp.float32)

    it1 = jnp.dtype(x1.dtype).itemsize
    it2 = jnp.dtype(x2.dtype).itemsize
    per_row_bytes = D * (it1 + it2)

    phys_vmem = _physical_vmem_bytes()
    # Pipeline-buffer budget (2 embedding inputs x 2 pipeline buffers):
    # ~32 MiB on v5e/v6e (128 MiB VMEM), ~16 MiB per core on v7x (64 MiB VMEM).
    budget = min(32 * 1024 * 1024, phys_vmem // 4)

    if block_rows is None:
        block_rows = budget // max(1, 2 * per_row_bytes)
    block_rows = int(block_rows)
    if block_rows >= B:
        block_rows = B                              # single full-batch tile
    else:
        block_rows = max(8, (block_rows // 8) * 8)  # sublane-aligned sub-batch tiles

    num_tiles = pl.cdiv(B, block_rows)

    if num_cores is None:
        num_cores = _detect_num_tensorcores()
    num_cores = max(1, min(int(num_cores), num_tiles))
    tiles_per_core = pl.cdiv(num_tiles, num_cores)

    padded_tiles = num_cores * tiles_per_core != num_tiles   # odd tile count on 2 TCs
    partial_last = (B % block_rows) != 0
    needs_mask = partial_last or padded_tiles
    mask_from = (num_tiles - 1) if partial_last else num_tiles

    kernel = functools.partial(
        _contrastive_loss_kernel,
        margin=float(margin), batch_size=B, block_rows=block_rows,
        tiles_per_core=tiles_per_core, mask_from=mask_from, needs_mask=needs_mask)

    if padded_tiles:
        def emb_map(c, t):
            # Clamp the padded duplicate tile onto the last real tile so the DMA stays
            # in range; its contribution is masked out inside the kernel.
            return (jnp.minimum(c * tiles_per_core + t, num_tiles - 1), 0)
    else:
        def emb_map(c, t):
            return (c * tiles_per_core + t, 0)

    needed_vmem = (2 * block_rows * D * (it1 + it2)   # x1/x2 double-buffers
                   + 2 * block_rows * 4               # label double-buffer
                   + block_rows * 4                   # per-row accumulator scratch
                   + 2 * 8 * 128 * 4                  # lane-dense per-core output tile
                   + (2 << 20))                       # Mosaic internal slack
    vmem_limit = int(min(max(needed_vmem, 16 * 1024 * 1024), phys_vmem * 7 // 8))

    cost = pl.CostEstimate(
        flops=4 * B * D + 10 * B,
        transcendentals=B,
        bytes_accessed=B * D * (it1 + it2) + B * 4 + num_cores * 8 * 128 * 4,
    )

    core_sem = pltpu.CORE_PARALLEL if num_cores > 1 else pltpu.ARBITRARY

    partials = pl.pallas_call(
        kernel,
        out_shape=jax.ShapeDtypeStruct((num_cores, 8, 128), jnp.float32),
        grid=(num_cores, tiles_per_core),
        in_specs=[
            pl.BlockSpec((block_rows, D), emb_map),
            pl.BlockSpec((block_rows, D), emb_map),
            pl.BlockSpec((block_rows, 1), emb_map),
        ],
        out_specs=pl.BlockSpec((1, 8, 128), lambda c, t: (c, 0, 0)),
        scratch_shapes=[pltpu.VMEM((block_rows, 1), jnp.float32)],
        compiler_params=pltpu.CompilerParams(
            dimension_semantics=(core_sem, pltpu.ARBITRARY),
            vmem_limit_bytes=vmem_limit),
        cost_estimate=cost,
    )(x1, x2, lbl2d)

    # TODO(synk): for very large D (tens of thousands+), add an inner 'arbitrary'
    # D-tiling axis with a (TB, 1) partial-sum scratch to bound per-step VMEM.
    return jnp.sum(partials[:, 0, 0]) / B


def contrastive_loss_ref(x1, x2, label, margin=1.0):
    # Pure-JAX reference mirroring the PyTorch forward.
    diff = x1.astype(jnp.float32) - x2.astype(jnp.float32) + EPS
    dist = jnp.sqrt(jnp.sum(diff * diff, axis=-1))
    lbl = label.astype(jnp.float32)
    loss = lbl * dist**2 + (1.0 - lbl) * jnp.maximum(margin - dist, 0.0) ** 2
    return jnp.mean(loss)


if __name__ == "__main__":
    key = jax.random.PRNGKey(0)
    k1, k2, k3, k4, k5 = jax.random.split(key, 5)

    # Case 1: small single-tile path (toy shapes consistent with the module).
    B, D = 8, 32
    x1 = jax.random.normal(k1, (B, D), dtype=jnp.float32)
    x2 = jax.random.normal(k2, (B, D), dtype=jnp.float32)
    label = jax.random.bernoulli(k3, 0.5, (B,)).astype(jnp.float32)
    out = contrastive_loss(x1, x2, label)
    jax.block_until_ready(out)
    ref = contrastive_loss_ref(x1, x2, label)
    assert jnp.allclose(out, ref, rtol=1e-5, atol=1e-5), (out, ref)

    # Case 2: multi-tile batch with a partial (masked) last tile, f32.
    B2, D2 = 20, 32
    x1b = jax.random.normal(k4, (B2, D2), dtype=jnp.float32)
    x2b = jax.random.normal(k5, (B2, D2), dtype=jnp.float32)
    labelb = (jnp.arange(B2) % 2 == 0).astype(jnp.float32)
    outb = contrastive_loss(x1b, x2b, labelb, block_rows=8)
    jax.block_until_ready(outb)
    refb = contrastive_loss_ref(x1b, x2b, labelb)
    assert jnp.allclose(outb, refb, rtol=1e-5, atol=1e-5), (outb, refb)

    # Case 3: bf16 inputs (native-dtype DMA + in-kernel f32 cast), forced small tiles.
    B3, D3 = 64, 128
    x1c = jax.random.normal(jax.random.PRNGKey(1), (B3, D3), dtype=jnp.float32).astype(jnp.bfloat16)
    x2c = jax.random.normal(jax.random.PRNGKey(2), (B3, D3), dtype=jnp.float32).astype(jnp.bfloat16)
    labelc = (jnp.arange(B3) % 3 == 0).astype(jnp.float32)
    outc = contrastive_loss(x1c, x2c, labelc, block_rows=16)
    jax.block_until_ready(outc)
    refc = contrastive_loss_ref(x1c, x2c, labelc)
    assert jnp.allclose(outc, refc, rtol=1e-3, atol=1e-3), (outc, refc)

    # Case 4: auto-sized tiles from the VMEM budget (default block_rows path).
    B4, D4 = 1024, 256
    x1d = jax.random.normal(jax.random.PRNGKey(3), (B4, D4), dtype=jnp.float32)
    x2d = jax.random.normal(jax.random.PRNGKey(4), (B4, D4), dtype=jnp.float32)
    labeld = (jnp.arange(B4) % 2 == 0).astype(jnp.float32)
    outd = contrastive_loss(x1d, x2d, labeld)
    jax.block_until_ready(outd)
    refd = contrastive_loss_ref(x1d, x2d, labeld)
    assert jnp.allclose(outd, refd, rtol=1e-5, atol=1e-5), (outd, refd)

    print("KERNEL_OK")
</pallas_src>

<mosaic_0001>
module attributes {stable_mosaic.version = 11 : i64} {
  func.func @_contrastive_loss_kernel(%arg0: i32, %arg1: i32, %arg2: memref<8x32xf32, #tpu.memory_space<vmem>>, %arg3: memref<8x32xf32, #tpu.memory_space<vmem>>, %arg4: memref<8x1xf32, #tpu.memory_space<vmem>>, %arg5: memref<1x8x128xf32, #tpu.memory_space<vmem>>, %arg6: memref<8x1xf32, #tpu.memory_space<vmem>>) attributes {dimension_semantics = [#tpu.dimension_semantics<arbitrary>, #tpu.dimension_semantics<arbitrary>], iteration_bounds = array<i64: 1, 1>, scalar_prefetch = 0 : i64, scratch_operands = 1 : i64, tpu.core_type = #tpu.core_type<tc>, window_params = [{transform_indices = @transform_0, window_bounds = array<i64: 8, 32>}, {transform_indices = @transform_1, window_bounds = array<i64: 8, 32>}, {transform_indices = @transform_2, window_bounds = array<i64: 8, 1>}, {transform_indices = @transform_3, window_bounds = array<i64: 1, 8, 128>}]} {
    %c0_i32 = arith.constant 0 : i32
    %0 = arith.cmpi eq, %arg1, %c0_i32 : i32
    %1 = arith.extui %0 : i1 to i32
    %c0_i32_0 = arith.constant 0 : i32
    %2 = arith.cmpi ne, %1, %c0_i32_0 : i32
    scf.if %2 {
      %cst_16 = arith.constant 0.000000e+00 : f32
      %29 = vector.broadcast %cst_16 : f32 to vector<8x1xf32>
      %c0_17 = arith.constant 0 : index
      %c0_18 = arith.constant 0 : index
      %30 = vector.load %arg6[%c0_17, %c0_18] : memref<8x1xf32, #tpu.memory_space<vmem>>, vector<8x1xf32>
      tpu.vector_store %arg6[%c0_17, %c0_18], %29 {strides = array<i32>} : memref<8x1xf32, #tpu.memory_space<vmem>>, vector<8x1xf32>,
    } else {
    }
    %c0 = arith.constant 0 : index
    %c0_1 = arith.constant 0 : index
    %3 = vector.load %arg2[%c0, %c0_1] : memref<8x32xf32, #tpu.memory_space<vmem>>, vector<8x32xf32>
    %c0_2 = arith.constant 0 : index
    %c0_3 = arith.constant 0 : index
    %4 = vector.load %arg3[%c0_2, %c0_3] : memref<8x32xf32, #tpu.memory_space<vmem>>, vector<8x32xf32>
    %c0_4 = arith.constant 0 : index
    %c0_5 = arith.constant 0 : index
    %5 = vector.load %arg4[%c0_4, %c0_5] : memref<8x1xf32, #tpu.memory_space<vmem>>, vector<8x1xf32>
    %6 = arith.subf %3, %4 : vector<8x32xf32>
    %cst = arith.constant 9.99999997E-7 : f32
    %7 = vector.broadcast %cst : f32 to vector<8x32xf32>
    %8 = arith.addf %6, %7 : vector<8x32xf32>
    %9 = arith.mulf %8, %8 : vector<8x32xf32>
    %cst_6 = arith.constant dense<0.000000e+00> : vector<8xf32>
    %10 = vector.multi_reduction <add>, %9, %cst_6 [1] : vector<8x32xf32> to vector<8xf32>
    %11 = vector.shape_cast %10 : vector<8xf32> to vector<8x1xf32>
    %12 = math.sqrt %11 : vector<8x1xf32>
    %cst_7 = arith.constant 1.000000e+00 : f32
    %13 = vector.broadcast %cst_7 : f32 to vector<8x1xf32>
    %14 = arith.subf %13, %12 : vector<8x1xf32>
    %cst_8 = arith.constant 0.000000e+00 : f32
    %15 = vector.broadcast %cst_8 : f32 to vector<8x1xf32>
    %16 = arith.maximumf %14, %15 : vector<8x1xf32>
    %17 = arith.mulf %5, %11 : vector<8x1xf32>
    %cst_9 = arith.constant 1.000000e+00 : f32
    %18 = vector.broadcast %cst_9 : f32 to vector<8x1xf32>
    %19 = arith.subf %18, %5 : vector<8x1xf32>
    %20 = arith.mulf %16, %16 : vector<8x1xf32>
    %21 = arith.mulf %19, %20 : vector<8x1xf32>
    %22 = arith.addf %17, %21 : vector<8x1xf32>
    %c0_10 = arith.constant 0 : index
    %c0_11 = arith.constant 0 : index
    %23 = vector.load %arg6[%c0_10, %c0_11] : memref<8x1xf32, #tpu.memory_space<vmem>>, vector<8x1xf32>
    %24 = arith.addf %23, %22 : vector<8x1xf32>
    %c0_12 = arith.constant 0 : index
    %c0_13 = arith.constant 0 : index
    %25 = vector.load %arg6[%c0_12, %c0_13] : memref<8x1xf32, #tpu.memory_space<vmem>>, vector<8x1xf32>
    tpu.vector_store %arg6[%c0_12, %c0_13], %24 {strides = array<i32>} : memref<8x1xf32, #tpu.memory_space<vmem>>, vector<8x1xf32>,
    %c0_i32_14 = arith.constant 0 : i32
    %26 = arith.cmpi eq, %arg1, %c0_i32_14 : i32
    %27 = arith.extui %26 : i1 to i32
    %c0_i32_15 = arith.constant 0 : i32
    %28 = arith.cmpi ne, %27, %c0_i32_15 : i32
    scf.if %28 {
      %c0_16 = arith.constant 0 : index
      %c0_17 = arith.constant 0 : index
      %29 = vector.load %arg6[%c0_16, %c0_17] : memref<8x1xf32, #tpu.memory_space<vmem>>, vector<8x1xf32>
      %30 = vector.shape_cast %29 : vector<8x1xf32> to vector<1x8x1xf32>
      %cst_18 = arith.constant dense<0.000000e+00> : vector<1xf32>
      %31 = vector.multi_reduction <add>, %30, %cst_18 [1, 2] : vector<1x8x1xf32> to vector<1xf32>
      %32 = vector.shape_cast %31 : vector<1xf32> to vector<1x1x1xf32>
      %33 = vector.extract %32[0, 0, 0] : f32 from vector<1x1x1xf32>
      %34 = vector.broadcast %33 : f32 to vector<1x8x128xf32>
      %c0_19 = arith.constant 0 : index
      %c0_20 = arith.constant 0 : index
      %c0_21 = arith.constant 0 : index
      %35 = vector.load %arg5[%c0_19, %c0_20, %c0_21] : memref<1x8x128xf32, #tpu.memory_space<vmem>>, vector<1x8x128xf32>
      tpu.vector_store %arg5[%c0_19, %c0_20, %c0_21], %34 {strides = array<i32>} : memref<1x8x128xf32, #tpu.memory_space<vmem>>, vector<1x8x128xf32>,
    } else {
    }
    return
  }
  func.func @transform_0(%arg0: i32, %arg1: i32) -> (i32, i32) {
    %c1_i32 = arith.constant 1 : i32
    %0 = arith.muli %arg0, %c1_i32 : i32
    %1 = arith.addi %0, %arg1 : i32
    %c0_i32 = arith.constant 0 : i32
    %c0_i32_0 = arith.constant 0 : i32
    return %1, %c0_i32 : i32, i32
  }
  func.func @transform_1(%arg0: i32, %arg1: i32) -> (i32, i32) {
    %c1_i32 = arith.constant 1 : i32
    %0 = arith.muli %arg0, %c1_i32 : i32
    %1 = arith.addi %0, %arg1 : i32
    %c0_i32 = arith.constant 0 : i32
    %c0_i32_0 = arith.constant 0 : i32
    return %1, %c0_i32 : i32, i32
  }
  func.func @transform_2(%arg0: i32, %arg1: i32) -> (i32, i32) {
    %c1_i32 = arith.constant 1 : i32
    %0 = arith.muli %arg0, %c1_i32 : i32
    %1 = arith.addi %0, %arg1 : i32
    %c0_i32 = arith.constant 0 : i32
    %c0_i32_0 = arith.constant 0 : i32
    return %1, %c0_i32 : i32, i32
  }
  func.func @transform_3(%arg0: i32, %arg1: i32) -> (i32, i32, i32) {
    %c0_i32 = arith.constant 0 : i32
    %c0_i32_0 = arith.constant 0 : i32
    %c0_i32_1 = arith.constant 0 : i32
    return %arg0, %c0_i32, %c0_i32_0 : i32, i32, i32
  }
}

</mosaic_0001>

<bundles_post_ra>
// kernel: tpu_custom_call.1
= control target key start
LH: loop header
LB: loop body
LE: loop exit
PB: predicated region body
PF: predicated region fallthrough
CT: control target
= control target key end

     0   :  { %8 = vsyncpa [#allocation4], 0  ;;  %s248_s0 = inlined_call_operand.vmem [shape: f32[8,32], index: 0, kind: input, shape index: {}]   ;;  %s249_s1 = inlined_call_operand.hbm [shape: f32[8,32], index: 1, kind: input, shape index: {}]   ;;  %s250_s2 = inlined_call_operand.vmem [shape: f32[8,1], index: 2, kind: input, shape index: {}]   ;;  %s251_s3 = inlined_call_operand.hbm [shape: f32[1,8,128], index: 3, kind: output, shape index: {}]  }
   0x1   :  { %9 = vsyncpa [#allocation5], 0  ;;  %s26_s14 = sshll.u32 %s249_s1, 4  ;;  %s210_s15 = smov [#allocation3]   ;;  %s27_s14 = int_to_ptr.hbm [resolvable:$true] %s26_s14 }
   0x2   :  { %s28_s16 = sshll.u32 %s210_s15, 4  ;;  %s29_s16 = int_to_ptr.vmem [resolvable:$true] %s28_s16 }
   0x3   :  { %31 = dma.hbm_to_vmem [thread:$0]  %s27_s14, 128, %s29_s16, [#allocation4]  }
   0x4   :  { %206 = dma.done.wait [#allocation4], 128  }
   0x5   :  { %207 = vsyncadd [#allocation4], 4294967168  ;;  %v73_v0 = vld [vmem:[%s248_s0] sm:$0xff]  ;;  %v74_v1 = vld [vmem:[#allocation3] sm:$0xff]  ;;  %vm79_vm0 = vcmask 261120   ;;  %vm71_vm1 = vcmask 7168  }
   0x6   :  { %v76_v2 = vsub.f32 %v73_v0, %v74_v1  ;;  %v211_v6 = vmov 0.0   ;;  %v75_v19 = vld [vmem:[%s250_s2] sm:$0xff]  ;;  %s212_s2 = smov [#allocation6]   ;;  %s129_s22 = sshll.u32 %s251_s3, 4  ;;  %s130_s22 = int_to_ptr.hbm [resolvable:$true] %s129_s22 }
   0x7   :  { %72 = vst.msk [vmem:[#allocation2] sm:$0xff] %vm71_vm1, %v211_v6  ;;  %v98_v20 = vsub.f32 1.0, %v75_v19  ;;  %s127_s19 = sshll.u32 %s212_s2, 4  ;;  %s128_s19 = int_to_ptr.vmem [resolvable:$true] %s127_s19 }
   0x8   :  { %v77_v3 = vadd.f32 1e-06, %v76_v2 }
   0xa   :  { %v78_v4 = vmul.f32 %v77_v3, %v77_v3 }
   0xc   :  { %v80_v5 = vsel %vm79_vm0, %v78_v4, 0.0 }
   0xd   :  { %81 = vadd.xlane.f32.xlu0 %v80_v5 }
   0xe   :  { %v102_v25 = vld [vmem:[#allocation2] sm:$0xff] }
  0x80   :  { %v82_v7 = vpop.xlane.xlu0 %81 }
  0x81   :  { %156 = vrsqrt.f32 %v82_v7  ;;  %vm90_vm2 = vcmp.eq.f32.partialorder %v82_v7, inf  ;;  %v93_v15 = vand.u32 2147483648, %v82_v7  ;;  %vm92_vm3 = vcmp.eq.f32.partialorder %v82_v7, 0.0 }
  0x82   :  { %v97_v23 = vmul.f32 %v82_v7, %v75_v19 }
  0x87   :  { %v157_v8 = vpop.eup %156 }
  0x88   :  { %v84_v9 = vmul.f32 %v157_v8, %v82_v7 }
  0x8a   :  { %v85_v10 = vmul.f32 %v157_v8, %v84_v9 }
  0x8c   :  { %v86_v11 = vmul.f32 0.5, %v85_v10 }
  0x8e   :  { %v87_v12 = vsub.f32 1.5, %v86_v11 }
  0x90   :  { %v88_v13 = vmul.f32 %v157_v8, %v87_v12 }
  0x92   :  { %v89_v14 = vmul.f32 %v88_v13, %v82_v7 }
  0x94   :  { %v91_v16 = vsel %vm90_vm2, %v82_v7, %v89_v14 }
  0x95   :  { %v94_v17 = vsel %vm92_vm3, %v93_v15, %v91_v16 }
  0x96   :  { %v95_v18 = vsub.f32 1.0, %v94_v17 }
  0x98   :  { %v96_v21 = vmax.f32 %v95_v18, 0.0 }
  0x9a   :  { %v99_v22 = vmul.f32 %v96_v21, %v96_v21 }
  0x9c   :  { %v100_v24 = vmul.f32 %v99_v22, %v98_v20 }
  0x9e   :  { %v101_v26 = vadd.f32 %v100_v24, %v97_v23 }
  0xa0   :  { %v103_v27 = vadd.f32 %v102_v25, %v101_v26 }
  0xa2   :  { %105 = vst.msk [vmem:[#allocation2] sm:$0xff] %vm71_vm1, %v103_v27 }
  0xa9   :  { %v109_v28 = vld [vmem:[#allocation2] sm:$0xff] }
  0xaa   :  { %v110_v29 = vsel %vm71_vm1, %v109_v28, 0.0 }
  0xab   :  { %111 = vadd.xlane.f32.xlu0 %v110_v29 }
 0x11e   :  { %v112_v30 = vpop.xlane.xlu0 %111 }
 0x11f   :  { %v113_v31 = vrot.slane %v112_v30, 4 }
 0x121   :  { %v114_v32 = vadd.f32 %v113_v31, %v112_v30 }
 0x123   :  { %v115_v33 = vrot.slane %v114_v32, 2 }
 0x125   :  { %v116_v34 = vadd.f32 %v115_v33, %v114_v32 }
 0x127   :  { %v117_v35 = vrot.slane %v116_v34, 1 }
 0x129   :  { %v118_v36 = vadd.f32 %v117_v35, %v116_v34 }
 0x12b   :  { %151 = vpush %v118_v36 }
 0x15c   :  { %s152_s23 = spop %151 }
 0x15d   :  { %v120_v37 = vstv %s152_s23 }
 0x15e   :  { %121 = vst [vmem:[#allocation6] sm:$0xff] %v120_v37 }
 0x15f   :  { %132 = dma.vmem_to_hbm [thread:$0]  %s128_s19, 128, %s130_s22, [#allocation5]  }
 0x160   :  { %208 = dma.done.wait [#allocation5], 128  }
 0x161   :  { %209 = vsyncadd [#allocation5], 4294967168 }
 0x162   :  { %137 = vsyncpa [#allocation4], 1 }
 0x163   :  { %138 = vsyncpa [#allocation5], 1 }

</bundles_post_ra>
